<compile_context>
chip_gen: v5e
topology: v5e:2x2
jax: 0.10.0
libtpu: 0.0.40
codegen_flags: <defaults>
</compile_context>

<pallas_src>
import functools
from dataclasses import dataclass
from typing import Optional

import jax
import jax.numpy as jnp
from jax.experimental import pallas as pl
from jax.experimental.pallas import tpu as pltpu


# ----------------------------------------------------------------------------
# Small helpers
# ----------------------------------------------------------------------------
def _round_up(x, m):
    return ((x + m - 1) // m) * m


def _vmem_capacity_bytes():
    try:
        return int(pltpu.get_tpu_info().vmem_capacity_bytes)
    except Exception:
        return 64 * 1024 * 1024  # conservative fallback (v7x per-core VMEM)


def _num_tensorcores():
    try:
        d = jax.devices()[0]
        for attr in ("num_cores", "core_count"):
            v = getattr(d, attr, None)
            if isinstance(v, int) and v > 0:
                return v
        if "v7" in str(getattr(d, "device_kind", "")).lower():
            return 2
    except Exception:
        pass
    return 1


# ----------------------------------------------------------------------------
# Pallas kernel: per-row averaged KL distance, KL = H_g - <q_g, x/T> + (max+lse)
# ----------------------------------------------------------------------------
def _glitter_kl_kernel(gid_ref, stu_s_ref, stu_e_ref, qs_t_ref, qe_t_ref, h_ref,
                       out_ref, *, inv_t):
    """gid_ref   : (tm, 1) int32    group id of each student row
       stu_*_ref : (tm, L)          student logits (f32 or bf16)
       q*_t_ref  : (L, G)  float32  softmax(teacher/T) tables, transposed (precomputed)
       h_ref     : (1, G)  float32  H_g = sum q*log q (start half + end half)
       out_ref   : (tm, 1) float32  0.5 * (KL_start + KL_end) per row
    """
    tm = gid_ref.shape[0]
    num_groups = qs_t_ref.shape[1]

    x_s = stu_s_ref[...].astype(jnp.float32) * inv_t
    x_e = stu_e_ref[...].astype(jnp.float32) * inv_t

    # Per-row log-softmax normalizer folded into a scalar: max_i + logsumexp_i.
    m_s = jnp.max(x_s, axis=-1, keepdims=True)
    m_e = jnp.max(x_e, axis=-1, keepdims=True)
    lse = (m_s + jnp.log(jnp.sum(jnp.exp(x_s - m_s), axis=-1, keepdims=True))
           + m_e + jnp.log(jnp.sum(jnp.exp(x_e - m_e), axis=-1, keepdims=True)))  # (tm,1)

    # Cross terms against every group's teacher distribution, both halves:
    #   cross[i, g] = <q_s_g, x_s_i/T> + <q_e_g, x_e_i/T>    (two small MXU matmuls)
    cross = jnp.dot(x_s, qs_t_ref[...], preferred_element_type=jnp.float32)
    cross = cross + jnp.dot(x_e, qe_t_ref[...], preferred_element_type=jnp.float32)  # (tm,G)

    # Select each row's own group with a one-hot compare on the VPU.
    group_iota = jax.lax.broadcasted_iota(jnp.int32, (tm, num_groups), 1)
    onehot = gid_ref[...] == group_iota                                   # (tm, G) bool
    picked = jnp.sum(jnp.where(onehot, h_ref[...] - cross, 0.0),
                     axis=-1, keepdims=True)                              # (tm, 1)

    out_ref[...] = 0.5 * (picked + lse)


# ----------------------------------------------------------------------------
# Grid-invariant teacher precompute (hoisted out of the grid loop)
# ----------------------------------------------------------------------------
def _teacher_tables(tea_start_table, tea_end_table, temperature):
    def soft(tab):
        z = tab.astype(jnp.float32) / temperature
        z = z - jnp.max(z, axis=-1, keepdims=True)
        log_q = z - jnp.log(jnp.sum(jnp.exp(z), axis=-1, keepdims=True))
        q = jnp.exp(log_q)
        h = jnp.sum(q * log_q, axis=-1)                 # (G,)  == sum q*log q
        return q, h

    q_s, h_s = soft(tea_start_table)
    q_e, h_e = soft(tea_end_table)
    return (jnp.transpose(q_s),                         # (L_s, G)
            jnp.transpose(q_e),                         # (L_e, G)
            (h_s + h_e)[None, :].astype(jnp.float32))   # (1, G)


# ----------------------------------------------------------------------------
# Tile sizing / VMEM budgeting (chip-aware)
# ----------------------------------------------------------------------------
def _choose_tm(num_rows, l_start, l_end, itemsize, num_cores):
    ls = _round_up(l_start, 128)
    le = _round_up(l_end, 128)
    # Per-row VMEM bytes of one grid step:
    #   2 pipeline buffers per student input, ~4 live (row, L) f32 body temporaries,
    #   and the lane-padded (tm,1)->(tm,128) gid/out blocks (2 refs x 2 buffers).
    per_row = 2 * (ls + le) * itemsize + 4 * max(ls, le) * 4 + 4 * 128 * 4
    budget = int(0.35 * _vmem_capacity_bytes())
    tm = max(8, min(_round_up(max(budget // per_row, 8), 8), 2048))
    m8 = _round_up(max(num_rows, 1), 8)
    tm = min(tm, m8)
    if num_cores > 1 and tm >= m8 and m8 > 8:
        # Only on multi-TensorCore parts (v7x): keep >=2 steps so the "parallel"
        # grid axis can be sharded across cores.  Single-TC chips keep one step.
        tm = _round_up(-(-m8 // 2), 8)
    return tm


def _vmem_footprint_bytes(tm, l_start, l_end, itemsize, g):
    ls = _round_up(l_start, 128)
    le = _round_up(l_end, 128)
    gp = _round_up(g, 128)
    f = 2 * tm * (ls + le) * itemsize           # student blocks, double-buffered
    f += 2 * 2 * tm * 128 * 4                   # gid + out blocks (lane-padded), x2 buffers
    f += 2 * ((ls + le) * gp + 8 * gp) * 4      # teacher q tables + H, double-buffered
    f += 4 * tm * max(ls, le) * 4               # live f32 temporaries in the body
    return f


# ----------------------------------------------------------------------------
# Wrapper: per-row KL distances with the teacher-row gather fused away
# ----------------------------------------------------------------------------
def kl_distances(stu_start, stu_end, tea_start_table, tea_end_table, group_ids,
                 temperature, *, tm=None):
    """distances[i] = 0.5*(KL_start + KL_end) of student row i against its group's
    teacher row tea_*_table[group_ids[i]]; no [M, L] teacher intermediate is built."""
    m, l_start = stu_start.shape
    m2, l_end = stu_end.shape
    g, lts = tea_start_table.shape
    g2, lte = tea_end_table.shape
    assert m == m2 and g == g2 and lts == l_start and lte == l_end
    assert group_ids.shape == (m,)

    itemsize = max(jnp.dtype(stu_start.dtype).itemsize,
                   jnp.dtype(stu_end.dtype).itemsize)
    if tm is None:
        tm = _choose_tm(m, l_start, l_end, itemsize, _num_tensorcores())

    # Grid-invariant teacher softmax / entropy computed once, outside the grid loop.
    qs_t, qe_t, h_sum = _teacher_tables(tea_start_table, tea_end_table, temperature)

    # Tiny padding to the sublane granule; the grid uses cdiv and Pallas masks the
    # partial trailing block.
    m_pad = _round_up(m, 8)
    gids = group_ids.astype(jnp.int32)
    if m_pad != m:
        pad = m_pad - m
        stu_start = jnp.pad(stu_start, ((0, pad), (0, 0)))
        stu_end = jnp.pad(stu_end, ((0, pad), (0, 0)))
        gids = jnp.pad(gids, (0, pad))
    gids = gids.reshape(m_pad, 1)

    vmem_cap = _vmem_capacity_bytes()
    vmem_limit = min(int(0.8 * vmem_cap),
                     max(_vmem_footprint_bytes(tm, l_start, l_end, itemsize, g)
                         + (8 << 20), 32 << 20))

    grid = (pl.cdiv(m_pad, tm),)
    kernel = functools.partial(_glitter_kl_kernel, inv_t=1.0 / float(temperature))

    # Note: teacher-table in_specs have a constant index_map so they are not
    # re-DMA'd per step; they are KB-scale here, so single-buffering them was not
    # worth the pipeline_mode tweak.
    out = pl.pallas_call(
        kernel,
        out_shape=jax.ShapeDtypeStruct((m_pad, 1), jnp.float32),
        grid_spec=pltpu.PrefetchScalarGridSpec(
            num_scalar_prefetch=0,
            grid=grid,
            in_specs=[
                pl.BlockSpec((tm, 1), lambda i: (i, 0)),         # group ids
                pl.BlockSpec((tm, l_start), lambda i: (i, 0)),   # student start logits
                pl.BlockSpec((tm, l_end), lambda i: (i, 0)),     # student end logits
                pl.BlockSpec((l_start, g), lambda i: (0, 0)),    # softmax(tea_s/T)^T
                pl.BlockSpec((l_end, g), lambda i: (0, 0)),      # softmax(tea_e/T)^T
                pl.BlockSpec((1, g), lambda i: (0, 0)),          # H_g (start + end)
            ],
            out_specs=pl.BlockSpec((tm, 1), lambda i: (i, 0)),
        ),
        compiler_params=pltpu.CompilerParams(
            dimension_semantics=("parallel",),
            vmem_limit_bytes=int(vmem_limit),
        ),
    )(gids, stu_start, stu_end, qs_t, qe_t, h_sum)
    return out[:m, 0]


# ----------------------------------------------------------------------------
# Output container (mirrors QuestionAnsweringGlitterOutput)
# ----------------------------------------------------------------------------
@dataclass
class QuestionAnsweringGlitterOutput:
    selected_neighbors: Optional[jnp.ndarray]
    selected_ranks: Optional[jnp.ndarray] = None
    teacher_start_logits: Optional[jnp.ndarray] = None
    teacher_end_logits: Optional[jnp.ndarray] = None
    valid_mask: Optional[jnp.ndarray] = None  # static-shape stand-in for torch's dynamic filtering


# ----------------------------------------------------------------------------
# Module equivalent
# ----------------------------------------------------------------------------
class GlitterForQuestionAnswering:
    def __init__(self, teacher_start_logits, teacher_end_logits, temperature, num_augments):
        self.teacher_start_logits = teacher_start_logits
        self.teacher_end_logits = teacher_end_logits
        self.temperature = float(temperature)
        self.num_augments = int(num_augments)

    def forward(self, stu_start_logits, stu_end_logits, augment_rank: int,
                nn_mask, indices, nn_ranks=None) -> QuestionAnsweringGlitterOutput:
        assert indices is not None
        assert int(augment_rank) >= 1
        l_start = stu_start_logits.shape[-1]
        l_end = stu_end_logits.shape[-1]
        m = stu_start_logits.shape[0]
        num_groups = int(indices.shape[0])
        nn_mask = nn_mask.astype(jnp.int32)

        # Only the small per-original-example teacher table is materialized; the
        # per-neighbor expansion teacher[indices[nn_mask]] is fused into the kernel.
        tea_start_table = self.teacher_start_logits[indices, :l_start]   # [G, L]
        tea_end_table = self.teacher_end_logits[indices, :l_end]         # [G, L]

        if m == 0:
            return QuestionAnsweringGlitterOutput(None, None, None, None, None)

        # --- hot path: per-row KL distances (Pallas kernel, fused gather) ---
        distances = kl_distances(stu_start_logits, stu_end_logits,
                                 tea_start_table, tea_end_table, nn_mask,
                                 self.temperature)                        # [M]

        # --- scatter_max selection loop (plain-JAX glue, static shapes) ---
        group_eq = nn_mask[None, :] == jnp.arange(num_groups, dtype=jnp.int32)[:, None]  # [G, M]
        dist = distances
        sel_idx = jnp.zeros((num_groups,), jnp.int32)
        sel_dist = jnp.full((num_groups,), -jnp.inf, jnp.float32)
        for j in range(int(augment_rank)):
            masked = jnp.where(group_eq, dist[None, :], -jnp.inf)         # [G, M]
            sel_dist = jnp.max(masked, axis=-1)                           # scatter_max values
            sel_idx = jnp.argmax(masked, axis=-1).astype(jnp.int32)       # scatter_max argmax
            if j > 0:
                # mirrors torch: (_dists != 0) & ~_dists.isinf()
                keep = (sel_dist != 0.0) & (~jnp.isinf(sel_dist))
            else:
                keep = jnp.isfinite(sel_dist)  # guard empty groups (argmax defaults to 0)
            # distances[_indices] = -inf, but only through unique in-group indices;
            # dropped groups route to an out-of-range index (mode="drop") so there is
            # no duplicate-index scatter (which would be nondeterministic).
            safe_idx = jnp.where(keep, sel_idx, m)
            dist = dist.at[safe_idx].set(-jnp.inf, mode="drop")

        if int(augment_rank) > 1:
            valid = (sel_dist != 0.0) & (~jnp.isinf(sel_dist))
        else:
            valid = jnp.isfinite(sel_dist)
        # TODO(synk): torch compacts exhausted groups into a dynamic-length tensor;
        #             static shapes here keep all G slots and report `valid_mask`.

        selected_ranks = nn_ranks[sel_idx] if nn_ranks is not None else None
        sel_groups = nn_mask[sel_idx]
        return QuestionAnsweringGlitterOutput(
            selected_neighbors=sel_idx,
            selected_ranks=selected_ranks,
            teacher_start_logits=tea_start_table[sel_groups],
            teacher_end_logits=tea_end_table[sel_groups],
            valid_mask=valid,
        )


# ----------------------------------------------------------------------------
# Pure-JAX reference for the kernel (correctness check)
# ----------------------------------------------------------------------------
def _kl_distances_ref(stu_s, stu_e, tea_s, tea_e, temperature):
    def kl(stu, tea):
        log_p = jax.nn.log_softmax(stu / temperature, axis=-1)
        q = jax.nn.softmax(tea / temperature, axis=-1)
        log_q = jax.nn.log_softmax(tea / temperature, axis=-1)
        return jnp.sum(q * (log_q - log_p), axis=-1)
    return 0.5 * (kl(stu_s, tea_s) + kl(stu_e, tea_e))


if __name__ == "__main__":
    key = jax.random.PRNGKey(0)
    k1, k2, k3, k4, k5, k6 = jax.random.split(key, 6)

    # Teacher bank of 32 examples with 192-token logits; 16 augmented neighbors
    # in 4 groups of 4; student seq_len 128.
    N_TOTAL, L_FULL, L = 32, 192, 128
    NUM_GROUPS, NEIGHBORS_PER_GROUP = 4, 4
    M = NUM_GROUPS * NEIGHBORS_PER_GROUP  # 16

    teacher_start = jax.random.normal(k1, (N_TOTAL, L_FULL), dtype=jnp.float32)
    teacher_end = jax.random.normal(k2, (N_TOTAL, L_FULL), dtype=jnp.float32)
    stu_start = jax.random.normal(k3, (M, L), dtype=jnp.float32)
    stu_end = jax.random.normal(k4, (M, L), dtype=jnp.float32)

    nn_mask = jnp.repeat(jnp.arange(NUM_GROUPS, dtype=jnp.int32), NEIGHBORS_PER_GROUP)
    indices = jax.random.randint(k5, (NUM_GROUPS,), 0, N_TOTAL, dtype=jnp.int32)
    nn_ranks = jax.random.randint(k6, (M,), 0, 10, dtype=jnp.int32)

    model = GlitterForQuestionAnswering(teacher_start, teacher_end,
                                        temperature=2.0, num_augments=4)
    out = model.forward(stu_start, stu_end, augment_rank=2,
                        nn_mask=nn_mask, indices=indices, nn_ranks=nn_ranks)
    jax.block_until_ready(out.selected_neighbors)
    jax.block_until_ready(out.teacher_start_logits)

    # --- verify the Pallas hot path against pure JAX (f32 inputs) ---
    tea_s_tab = teacher_start[indices, :L]
    tea_e_tab = teacher_end[indices, :L]
    d_kernel = kl_distances(stu_start, stu_end, tea_s_tab, tea_e_tab, nn_mask, 2.0)
    d_ref = _kl_distances_ref(stu_start, stu_end,
                              tea_s_tab[nn_mask], tea_e_tab[nn_mask], 2.0)
    jax.block_until_ready(d_kernel)
    assert jnp.allclose(d_kernel, d_ref, atol=1e-4, rtol=1e-4), \
        float(jnp.max(jnp.abs(d_kernel - d_ref)))

    # --- bf16 inputs (halved HBM traffic); kernel upcasts internally ---
    sb_s, sb_e = stu_start.astype(jnp.bfloat16), stu_end.astype(jnp.bfloat16)
    tb_s, tb_e = tea_s_tab.astype(jnp.bfloat16), tea_e_tab.astype(jnp.bfloat16)
    d_bf16 = kl_distances(sb_s, sb_e, tb_s, tb_e, nn_mask, 2.0)
    d_ref_bf16 = _kl_distances_ref(sb_s.astype(jnp.float32), sb_e.astype(jnp.float32),
                                   tb_s.astype(jnp.float32)[nn_mask],
                                   tb_e.astype(jnp.float32)[nn_mask], 2.0)
    assert jnp.allclose(d_bf16, d_ref_bf16, atol=2e-4, rtol=2e-4)

    # --- sanity checks on the selection glue (matches torch's 2nd-farthest) ---
    assert out.selected_neighbors.shape == (NUM_GROUPS,)
    assert out.teacher_start_logits.shape == (NUM_GROUPS, L)
    assert out.teacher_end_logits.shape == (NUM_GROUPS, L)
    assert out.selected_ranks.shape == (NUM_GROUPS,)
    assert bool(jnp.all(out.valid_mask))
    assert bool(jnp.all(nn_mask[out.selected_neighbors]
                        == jnp.arange(NUM_GROUPS, dtype=jnp.int32)))
    for gidx in range(NUM_GROUPS):
        members = jnp.arange(M)[nn_mask == gidx]
        order = members[jnp.argsort(-d_ref[members])]
        assert int(out.selected_neighbors[gidx]) == int(order[1])  # augment_rank=2
    assert bool(jnp.array_equal(
        out.teacher_start_logits,
        teacher_start[indices[nn_mask[out.selected_neighbors]], :L]))

    print("KERNEL_OK")
</pallas_src>

<mosaic_0001>
module attributes {stable_mosaic.version = 11 : i64} {
  func.func @_glitter_kl_kernel(%arg0: i32, %arg1: memref<16x1xi32, #tpu.memory_space<vmem>>, %arg2: memref<16x128xf32, #tpu.memory_space<vmem>>, %arg3: memref<16x128xf32, #tpu.memory_space<vmem>>, %arg4: memref<128x4xf32, #tpu.memory_space<vmem>>, %arg5: memref<128x4xf32, #tpu.memory_space<vmem>>, %arg6: memref<1x4xf32, #tpu.memory_space<vmem>>, %arg7: memref<16x1xf32, #tpu.memory_space<vmem>>) attributes {dimension_semantics = [#tpu.dimension_semantics<parallel>], iteration_bounds = array<i64: 1>, scalar_prefetch = 0 : i64, scratch_operands = 0 : i64, tpu.core_type = #tpu.core_type<tc>, window_params = [{transform_indices = @transform_0, window_bounds = array<i64: 16, 1>}, {transform_indices = @transform_1, window_bounds = array<i64: 16, 128>}, {transform_indices = @transform_2, window_bounds = array<i64: 16, 128>}, {pipeline_mode = #tpu.pipeline_mode<synchronous>, transform_indices = @transform_3, window_bounds = array<i64: 128, 4>}, {pipeline_mode = #tpu.pipeline_mode<synchronous>, transform_indices = @transform_4, window_bounds = array<i64: 128, 4>}, {pipeline_mode = #tpu.pipeline_mode<synchronous>, transform_indices = @transform_5, window_bounds = array<i64: 1, 4>}, {transform_indices = @transform_6, window_bounds = array<i64: 16, 1>}]} {
    %c0 = arith.constant 0 : index
    %c0_0 = arith.constant 0 : index
    %0 = vector.load %arg2[%c0, %c0_0] : memref<16x128xf32, #tpu.memory_space<vmem>>, vector<16x128xf32>
    %cst = arith.constant 5.000000e-01 : f32
    %1 = vector.broadcast %cst : f32 to vector<16x128xf32>
    %2 = arith.mulf %0, %1 : vector<16x128xf32>
    %c0_1 = arith.constant 0 : index
    %c0_2 = arith.constant 0 : index
    %3 = vector.load %arg3[%c0_1, %c0_2] : memref<16x128xf32, #tpu.memory_space<vmem>>, vector<16x128xf32>
    %cst_3 = arith.constant 5.000000e-01 : f32
    %4 = vector.broadcast %cst_3 : f32 to vector<16x128xf32>
    %5 = arith.mulf %3, %4 : vector<16x128xf32>
    %cst_4 = arith.constant dense<0xFF800000> : vector<16xf32>
    %6 = vector.multi_reduction <maximumf>, %2, %cst_4 [1] : vector<16x128xf32> to vector<16xf32>
    %7 = vector.shape_cast %6 : vector<16xf32> to vector<16x1xf32>
    %cst_5 = arith.constant dense<0xFF800000> : vector<16xf32>
    %8 = vector.multi_reduction <maximumf>, %5, %cst_5 [1] : vector<16x128xf32> to vector<16xf32>
    %9 = vector.shape_cast %8 : vector<16xf32> to vector<16x1xf32>
    %10 = vector.broadcast %7 : vector<16x1xf32> to vector<16x128xf32>
    %11 = arith.subf %2, %10 : vector<16x128xf32>
    %12 = math.exp %11 : vector<16x128xf32>
    %cst_6 = arith.constant dense<0.000000e+00> : vector<16xf32>
    %13 = vector.multi_reduction <add>, %12, %cst_6 [1] : vector<16x128xf32> to vector<16xf32>
    %14 = vector.shape_cast %13 : vector<16xf32> to vector<16x1xf32>
    %15 = math.log %14 : vector<16x1xf32>
    %16 = arith.addf %7, %15 : vector<16x1xf32>
    %17 = arith.addf %16, %9 : vector<16x1xf32>
    %18 = vector.broadcast %9 : vector<16x1xf32> to vector<16x128xf32>
    %19 = arith.subf %5, %18 : vector<16x128xf32>
    %20 = math.exp %19 : vector<16x128xf32>
    %cst_7 = arith.constant dense<0.000000e+00> : vector<16xf32>
    %21 = vector.multi_reduction <add>, %20, %cst_7 [1] : vector<16x128xf32> to vector<16xf32>
    %22 = vector.shape_cast %21 : vector<16xf32> to vector<16x1xf32>
    %23 = math.log %22 : vector<16x1xf32>
    %24 = arith.addf %17, %23 : vector<16x1xf32>
    %c0_8 = arith.constant 0 : index
    %c0_9 = arith.constant 0 : index
    %25 = vector.load %arg4[%c0_8, %c0_9] : memref<128x4xf32, #tpu.memory_space<vmem>>, vector<128x4xf32>
    %cst_10 = arith.constant dense<0.000000e+00> : vector<16x4xf32>
    %26 = tpu.matmul %2, %25, %cst_10 {dimension_numbers = #tpu.dot_dimension_numbers<[1], [0], [0], [1], [0, 0, 1, 1], [], []>} : vector<16x128xf32>, vector<128x4xf32>, vector<16x4xf32> -> vector<16x4xf32>
    %c0_11 = arith.constant 0 : index
    %c0_12 = arith.constant 0 : index
    %27 = vector.load %arg5[%c0_11, %c0_12] : memref<128x4xf32, #tpu.memory_space<vmem>>, vector<128x4xf32>
    %cst_13 = arith.constant dense<0.000000e+00> : vector<16x4xf32>
    %28 = tpu.matmul %5, %27, %cst_13 {dimension_numbers = #tpu.dot_dimension_numbers<[1], [0], [0], [1], [0, 0, 1, 1], [], []>} : vector<16x128xf32>, vector<128x4xf32>, vector<16x4xf32> -> vector<16x4xf32>
    %29 = arith.addf %26, %28 : vector<16x4xf32>
    %30 = tpu.iota {dimensions = array<i32: 1>} : vector<16x4xi32>
    %c0_14 = arith.constant 0 : index
    %c0_15 = arith.constant 0 : index
    %31 = vector.load %arg1[%c0_14, %c0_15] : memref<16x1xi32, #tpu.memory_space<vmem>>, vector<16x1xi32>
    %32 = vector.broadcast %31 : vector<16x1xi32> to vector<16x4xi32>
    %33 = arith.cmpi eq, %32, %30 : vector<16x4xi32>
    %c0_16 = arith.constant 0 : index
    %c0_17 = arith.constant 0 : index
    %34 = vector.load %arg6[%c0_16, %c0_17] : memref<1x4xf32, #tpu.memory_space<vmem>>, vector<1x4xf32>
    %35 = vector.broadcast %34 : vector<1x4xf32> to vector<16x4xf32>
    %36 = arith.subf %35, %29 : vector<16x4xf32>
    %cst_18 = arith.constant 0.000000e+00 : f32
    %37 = vector.broadcast %cst_18 : f32 to vector<16x4xf32>
    %38 = arith.select %33, %36, %37 : vector<16x4xi1>, vector<16x4xf32>
    %cst_19 = arith.constant dense<0.000000e+00> : vector<16xf32>
    %39 = vector.multi_reduction <add>, %38, %cst_19 [1] : vector<16x4xf32> to vector<16xf32>
    %40 = vector.shape_cast %39 : vector<16xf32> to vector<16x1xf32>
    %41 = arith.addf %40, %24 : vector<16x1xf32>
    %cst_20 = arith.constant 5.000000e-01 : f32
    %42 = vector.broadcast %cst_20 : f32 to vector<16x1xf32>
    %43 = arith.mulf %42, %41 : vector<16x1xf32>
    %c0_21 = arith.constant 0 : index
    %c0_22 = arith.constant 0 : index
    %44 = vector.load %arg7[%c0_21, %c0_22] : memref<16x1xf32, #tpu.memory_space<vmem>>, vector<16x1xf32>
    tpu.vector_store %arg7[%c0_21, %c0_22], %43 {strides = array<i32>} : memref<16x1xf32, #tpu.memory_space<vmem>>, vector<16x1xf32>,
    return
  }
  func.func @transform_0(%arg0: i32) -> (i32, i32) {
    %c0_i32 = arith.constant 0 : i32
    %c0_i32_0 = arith.constant 0 : i32
    return %arg0, %c0_i32 : i32, i32
  }
  func.func @transform_1(%arg0: i32) -> (i32, i32) {
    %c0_i32 = arith.constant 0 : i32
    %c0_i32_0 = arith.constant 0 : i32
    return %arg0, %c0_i32 : i32, i32
  }
  func.func @transform_2(%arg0: i32) -> (i32, i32) {
    %c0_i32 = arith.constant 0 : i32
    %c0_i32_0 = arith.constant 0 : i32
    return %arg0, %c0_i32 : i32, i32
  }
  func.func @transform_3(%arg0: i32) -> (i32, i32) {
    %c0_i32 = arith.constant 0 : i32
    %c0_i32_0 = arith.constant 0 : i32
    %c0_i32_1 = arith.constant 0 : i32
    return %c0_i32, %c0_i32_0 : i32, i32
  }
  func.func @transform_4(%arg0: i32) -> (i32, i32) {
    %c0_i32 = arith.constant 0 : i32
    %c0_i32_0 = arith.constant 0 : i32
    %c0_i32_1 = arith.constant 0 : i32
    return %c0_i32, %c0_i32_0 : i32, i32
  }
  func.func @transform_5(%arg0: i32) -> (i32, i32) {
    %c0_i32 = arith.constant 0 : i32
    %c0_i32_0 = arith.constant 0 : i32
    %c0_i32_1 = arith.constant 0 : i32
    return %c0_i32, %c0_i32_0 : i32, i32
  }
  func.func @transform_6(%arg0: i32) -> (i32, i32) {
    %c0_i32 = arith.constant 0 : i32
    %c0_i32_0 = arith.constant 0 : i32
    return %arg0, %c0_i32 : i32, i32
  }
}

</mosaic_0001>

<bundles_post_ra>
// kernel: tpu_custom_call.1
= control target key start
LH: loop header
LB: loop body
LE: loop exit
PB: predicated region body
PF: predicated region fallthrough
CT: control target
= control target key end

     0   :  { %v241_v41 = vmov 0   ;;  %v151_v59 = vlaneseq  ;;  %vm171_vm0 = vcmask 31744   ;;  %vm182_vm3 = vcmask 7168   ;;  %s420_s4 = inlined_call_operand.vmem [shape: f32[128,4], index: 4, kind: input, shape index: {}]   ;;  %s421_s3 = inlined_call_operand.vmem [shape: f32[128,4], index: 3, kind: input, shape index: {}]   ;;  %s422_s1 = inlined_call_operand.vmem [shape: f32[16,128], index: 1, kind: input, shape index: {}]   ;;  %s423_s2 = inlined_call_operand.vmem [shape: f32[16,128], index: 2, kind: input, shape index: {}]   ;;  %s424_s0 = inlined_call_operand.vmem [shape: s32[16,1], index: 0, kind: input, shape index: {}]   ;;  %s425_s5 = inlined_call_operand.vmem [shape: f32[1,4], index: 5, kind: input, shape index: {}]   ;;  %s426_s6 = inlined_call_operand.vmem [shape: f32[16,1], index: 6, kind: output, shape index: {}]  }
   0x1   :  { %v104_v0 = vld [vmem:[%s420_s4 + $0x78] sm:$0xff]  ;;  %v103_v2 = vld [vmem:[%s420_s4 + $0x70] sm:$0xff]  ;;  %v23_v4 = vld [vmem:[%s422_s1] sm:$0xff]  ;;  %222 = vset.pattern.permute.xlu2 %v241_v41  ;;  %223 = vset.pattern.permute.xlu0 %v241_v41 }
   0x2   :  { %v88_v1 = vld [vmem:[%s421_s3 + $0x78] sm:$0xff]  ;;  %105 = vmatpush.msra.mxu0 %v104_v0  ;;  %189 = vmatpush.msra.mxu2 %v104_v0  ;;  %v87_v3 = vld [vmem:[%s421_s3 + $0x70] sm:$0xff]  ;;  %v292_v5 = vmul.f32 0.5, %v23_v4  ;;  %v102_v6 = vld [vmem:[%s420_s4 + $0x68] sm:$0xff]  ;;  %v152_v63 = vand.u32 127, %v151_v59 }
   0x3   :  { %128 = vmatpush.msra.mxu1 %v88_v1  ;;  %205 = vmatpush.msra.mxu3 %v88_v1  ;;  %v86_v7 = vld [vmem:[%s421_s3 + $0x68] sm:$0xff]  ;;  %v27_v8 = vld [vmem:[%s423_s2] sm:$0xff]  ;;  %v100_v12 = vld [vmem:[%s420_s4 + $0x58] sm:$0xff] }
   0x4   :  { %106 = vmatpush.msra.mxu0 %v103_v2  ;;  %190 = vmatpush.msra.mxu2 %v103_v2  ;;  %v101_v9 = vld [vmem:[%s420_s4 + $0x60] sm:$0xff]  ;;  %v310_v11 = vmul.f32 0.5, %v27_v8  ;;  %v24_v13 = vld [vmem:[%s422_s1 + $0x8] sm:$0xff]  ;;  %v84_v14 = vld [vmem:[%s421_s3 + $0x58] sm:$0xff] }
   0x5   :  { %129 = vmatpush.msra.mxu1 %v87_v3  ;;  %206 = vmatpush.msra.mxu3 %v87_v3  ;;  %v85_v10 = vld [vmem:[%s421_s3 + $0x60] sm:$0xff]  ;;  %v99_v15 = vld [vmem:[%s420_s4 + $0x50] sm:$0xff]  ;;  %v328_v17 = vmul.f32 0.5, %v24_v13  ;;  %v98_v18 = vld [vmem:[%s420_s4 + $0x48] sm:$0xff] }
   0x6   :  { %31 = vmax.xlane.f32.xlu0 %v292_v5  ;;  %107 = vmatpush.msra.mxu0 %v102_v6  ;;  %v83_v16 = vld [vmem:[%s421_s3 + $0x50] sm:$0xff]  ;;  %v28_v19 = vld [vmem:[%s423_s2 + $0x8] sm:$0xff]  ;;  %v97_v21 = vld [vmem:[%s420_s4 + $0x40] sm:$0xff] }
   0x7   :  { %191 = vmatpush.msra.mxu2 %v102_v6  ;;  %130 = vmatpush.msra.mxu1 %v86_v7  ;;  %v82_v20 = vld [vmem:[%s421_s3 + $0x48] sm:$0xff]  ;;  %v81_v22 = vld [vmem:[%s421_s3 + $0x40] sm:$0xff]  ;;  %v346_v23 = vmul.f32 0.5, %v28_v19  ;;  %v96_v24 = vld [vmem:[%s420_s4 + $0x38] sm:$0xff] }
   0x8   :  { %207 = vmatpush.msra.mxu3 %v86_v7  ;;  %108 = vmatpush.msra.mxu0 %v101_v9  ;;  %v80_v25 = vld [vmem:[%s421_s3 + $0x38] sm:$0xff]  ;;  %v95_v26 = vld [vmem:[%s420_s4 + $0x30] sm:$0xff]  ;;  %v94_v28 = vld [vmem:[%s420_s4 + $0x28] sm:$0xff] }
   0x9   :  { %192 = vmatpush.msra.mxu2 %v101_v9  ;;  %131 = vmatpush.msra.mxu1 %v85_v10  ;;  %v79_v27 = vld [vmem:[%s421_s3 + $0x30] sm:$0xff]  ;;  %v78_v29 = vld [vmem:[%s421_s3 + $0x28] sm:$0xff]  ;;  %v93_v30 = vld [vmem:[%s420_s4 + $0x20] sm:$0xff] }
   0xa   :  { %208 = vmatpush.msra.mxu3 %v85_v10  ;;  %35 = vmax.xlane.f32.xlu1 %v310_v11  ;;  %v77_v31 = vld [vmem:[%s421_s3 + $0x20] sm:$0xff]  ;;  %v92_v32 = vld [vmem:[%s420_s4 + $0x18] sm:$0xff]  ;;  %v91_v34 = vld [vmem:[%s420_s4 + $0x10] sm:$0xff] }
   0xb   :  { %109 = vmatpush.msra.mxu0 %v100_v12  ;;  %193 = vmatpush.msra.mxu2 %v100_v12  ;;  %v76_v33 = vld [vmem:[%s421_s3 + $0x18] sm:$0xff]  ;;  %v75_v35 = vld [vmem:[%s421_s3 + $0x10] sm:$0xff]  ;;  %v90_v36 = vld [vmem:[%s420_s4 + $0x8] sm:$0xff] }
   0xc   :  { %132 = vmatpush.msra.mxu1 %v84_v14  ;;  %209 = vmatpush.msra.mxu3 %v84_v14  ;;  %v74_v37 = vld [vmem:[%s421_s3 + $0x8] sm:$0xff]  ;;  %v89_v38 = vld [vmem:[%s420_s4] sm:$0xff] }
   0xd   :  { %110 = vmatpush.msra.mxu0 %v99_v15  ;;  %194 = vmatpush.msra.mxu2 %v99_v15  ;;  %v73_v39 = vld [vmem:[%s421_s3] sm:$0xff]  ;;  %v154_v42 = vld [vmem:[%s424_s0 + $0x8] sm:$0xff] }
   0xe   :  { %133 = vmatpush.msra.mxu1 %v83_v16  ;;  %210 = vmatpush.msra.mxu3 %v83_v16  ;;  %v153_v40 = vld [vmem:[%s424_s0] sm:$0xff] }
   0xf   :  { %33 = vmax.xlane.f32.xlu0 %v328_v17  ;;  %111 = vmatpush.msra.mxu0 %v98_v18  ;;  %v224_v62 = vld [vmem:[%s425_s5] ss:$0 sm:$0xff] }
  0x10   :  { %195 = vmatpush.msra.mxu2 %v98_v18  ;;  %134 = vmatpush.msra.mxu1 %v82_v20 }
  0x11   :  { %211 = vmatpush.msra.mxu3 %v82_v20  ;;  %112 = vmatpush.msra.mxu0 %v97_v21 }
  0x12   :  { %196 = vmatpush.msra.mxu2 %v97_v21  ;;  %135 = vmatpush.msra.mxu1 %v81_v22 }
  0x13   :  { %212 = vmatpush.msra.mxu3 %v81_v22  ;;  %37 = vmax.xlane.f32.xlu1 %v346_v23 }
  0x14   :  { %113 = vmatpush.msra.mxu0 %v96_v24  ;;  %197 = vmatpush.msra.mxu2 %v96_v24 }
  0x15   :  { %136 = vmatpush.msra.mxu1 %v80_v25  ;;  %213 = vmatpush.msra.mxu3 %v80_v25 }
  0x16   :  { %114 = vmatpush.msra.mxu0 %v95_v26  ;;  %198 = vmatpush.msra.mxu2 %v95_v26 }
  0x17   :  { %137 = vmatpush.msra.mxu1 %v79_v27  ;;  %214 = vmatpush.msra.mxu3 %v79_v27 }
  0x18   :  { %115 = vmatpush.msra.mxu0 %v94_v28  ;;  %199 = vmatpush.msra.mxu2 %v94_v28 }
  0x19   :  { %138 = vmatpush.msra.mxu1 %v78_v29  ;;  %215 = vmatpush.msra.mxu3 %v78_v29 }
  0x1a   :  { %116 = vmatpush.msra.mxu0 %v93_v30  ;;  %200 = vmatpush.msra.mxu2 %v93_v30 }
  0x1b   :  { %139 = vmatpush.msra.mxu1 %v77_v31  ;;  %216 = vmatpush.msra.mxu3 %v77_v31 }
  0x1c   :  { %117 = vmatpush.msra.mxu0 %v92_v32  ;;  %201 = vmatpush.msra.mxu2 %v92_v32 }
  0x1d   :  { %140 = vmatpush.msra.mxu1 %v76_v33  ;;  %217 = vmatpush.msra.mxu3 %v76_v33 }
  0x1e   :  { %118 = vmatpush.msra.mxu0 %v91_v34  ;;  %202 = vmatpush.msra.mxu2 %v91_v34 }
  0x1f   :  { %141 = vmatpush.msra.mxu1 %v75_v35  ;;  %218 = vmatpush.msra.mxu3 %v75_v35 }
  0x20   :  { %119 = vmatpush.msra.mxu0 %v90_v36  ;;  %203 = vmatpush.msra.mxu2 %v90_v36 }
  0x21   :  { %142 = vmatpush.msra.mxu1 %v74_v37  ;;  %219 = vmatpush.msra.mxu3 %v74_v37 }
  0x22   :  { %120 = vmatpush.msra.mxu0 %v89_v38  ;;  %204 = vmatpush.msra.mxu2 %v89_v38 }
  0x23   :  { %143 = vmatpush.msra.mxu1 %v73_v39  ;;  %220 = vmatpush.msra.mxu3 %v73_v39 }
  0x24   :  { %121 = vmatmul.f32.vlgmr.msra.gmra.mxu0 %v310_v11  ;;  %124 = vmatmul.f32.vlgmr.msra.gmra.mxu2 %v346_v23 }
  0x25   :  { %144 = vmatmul.f32.vlgmr.msra.gmra.mxu1 %v292_v5  ;;  %147 = vmatmul.f32.vlgmr.msra.gmra.mxu3 %v328_v17 }
  0x26   :  { %156 = vperm.xlu2 %222, %v153_v40  }
  0x2e   :  { %159 = vperm.xlu2 %222, %v154_v42  }
  0x79   :  { %v32_v43 = vpop.xlane.xlu0 %31 }
  0x7a   :  { %v39_v44 = vsub.f32 %v292_v5, %v32_v43 }
  0x7c   :  { %v41_v45 = vmul.f32 1.442695, %v39_v44 }
  0x7d   :  { %v36_v46 = vpop.xlane.xlu1 %35 }
  0x7e   :  { %225 = vpow2.f32 %v41_v45  ;;  %v57_v47 = vsub.f32 %v310_v11, %v36_v46 }
  0x80   :  { %v59_v48 = vmul.f32 1.442695, %v57_v47  ;;  %v157_v60 = vpop.permute.xlu2 %156 }
  0x81   :  { %vm161_vm1 = vcmp.eq.s32.totalorder %v157_v60, %v152_v63 }
  0x82   :  { %227 = vpow2.f32 %v59_v48  ;;  %v34_v49 = vpop.xlane.xlu0 %33 }
  0x83   :  { %v40_v50 = vsub.f32 %v328_v17, %v34_v49 }
  0x84   :  { %v226_v51 = vpop.eup %225 }
  0x85   :  { %v43_v52 = vmul.f32 1.442695, %v40_v50  ;;  %45 = vadd.xlane.f32.xlu0 %v226_v51 }
  0x86   :  { %v38_v53 = vpop.xlane.xlu1 %37 }
  0x87   :  { %229 = vpow2.f32 %v43_v52  ;;  %v58_v54 = vsub.f32 %v346_v23, %v38_v53 }
  0x88   :  { %v228_v55 = vpop.eup %227  ;;  %v160_v7 = vpop.permute.xlu2 %159 }
  0x89   :  { %v61_v56 = vmul.f32 1.442695, %v58_v54  ;;  %63 = vadd.xlane.f32.xlu2 %v228_v55  ;;  %vm162_vm2 = vcmp.eq.s32.totalorder %v160_v7, %v152_v63 }
  0x8b   :  { %231 = vpow2.f32 %v61_v56 }
  0x8d   :  { %v230_v57 = vpop.eup %229 }
  0x8e   :  { %47 = vadd.xlane.f32.xlu1 %v230_v57 }
  0x91   :  { %v232_v58 = vpop.eup %231 }
  0x92   :  { %65 = vadd.xlane.f32.xlu0 %v232_v58 }
  0xa1   :  { %v122_v61 = vpop.f32.mrf.mxu0 }
  0xa2   :  { %v145_v0 = vpop.f32.mrf.mxu1 }
  0xa3   :  { %v146_v1 = vadd.f32 %v145_v0, %v122_v61 }
  0xa5   :  { %v167_v2 = vsub.f32 %v224_v62, %v146_v1 }
  0xa7   :  { %v125_v3 = vpop.f32.mrf.mxu2  ;;  %v169_v4 = vsel %vm161_vm1, %v167_v2, 0.0 }
  0xa8   :  { %v148_v5 = vpop.f32.mrf.mxu3  ;;  %v172_v6 = vsel %vm171_vm0, %v169_v4, 0.0 }
  0xa9   :  { %v149_v8 = vadd.f32 %v148_v5, %v125_v3  ;;  %173 = vadd.xlane.f32.xlu1 %v172_v6 }
  0xab   :  { %v168_v9 = vsub.f32 %v224_v62, %v149_v8 }
  0xad   :  { %v170_v10 = vsel %vm162_vm2, %v168_v9, 0.0 }
  0xae   :  { %v175_v11 = vsel %vm171_vm0, %v170_v10, 0.0 }
  0xaf   :  { %176 = vadd.xlane.f32.xlu0 %v175_v11 }
  0xf8   :  { %v46_v12 = vpop.xlane.xlu0 %45 }
  0xf9   :  { %233 = vlog2.f32 %v46_v12 }
  0xfc   :  { %v64_v14 = vpop.xlane.xlu2 %63 }
  0xff   :  { %v234_v15 = vpop.eup %233 }
 0x100   :  { %v50_v16 = vmul.f32 0.6931472, %v234_v15 }
 0x101   :  { %v48_v13 = vpop.xlane.xlu1 %47 }
 0x102   :  { %235 = vlog2.f32 %v48_v13  ;;  %v53_v19 = vadd.f32 %v50_v16, %v32_v43 }
 0x103   :  { %237 = vlog2.f32 %v64_v14 }
 0x104   :  { %v55_v23 = vadd.f32 %v53_v19, %v36_v46 }
 0x105   :  { %v66_v17 = vpop.xlane.xlu0 %65 }
 0x106   :  { %239 = vlog2.f32 %v66_v17 }
 0x108   :  { %v236_v18 = vpop.eup %235 }
 0x109   :  { %v238_v20 = vpop.eup %237  ;;  %v52_v21 = vmul.f32 0.6931472, %v236_v18 }
 0x10a   :  { %v68_v22 = vmul.f32 0.6931472, %v238_v20 }
 0x10b   :  { %v54_v24 = vadd.f32 %v52_v21, %v34_v49 }
 0x10c   :  { %v240_v25 = vpop.eup %239  ;;  %v71_v26 = vadd.f32 %v68_v22, %v55_v23 }
 0x10d   :  { %v70_v28 = vmul.f32 0.6931472, %v240_v25  ;;  %v56_v30 = vadd.f32 %v54_v24, %v38_v53 }
 0x10f   :  { %v72_v32 = vadd.f32 %v70_v28, %v56_v30 }
 0x11c   :  { %v174_v27 = vpop.xlane.xlu1 %173 }
 0x11d   :  { %v178_v29 = vadd.f32 %v174_v27, %v71_v26 }
 0x11f   :  { %v180_v31 = vmul.f32 0.5, %v178_v29 }
 0x121   :  { %183 = vst.msk [vmem:[%s426_s6] sm:$0xff] %vm182_vm3, %v180_v31 }
 0x122   :  { %v177_v33 = vpop.xlane.xlu0 %176 }
 0x123   :  { %v179_v34 = vadd.f32 %v177_v33, %v72_v32 }
 0x125   :  { %v181_v35 = vmul.f32 0.5, %v179_v34 }
 0x127   :  { %184 = vst.msk [vmem:[%s426_s6 + $0x8] sm:$0xff] %vm182_vm3, %v181_v35 }

</bundles_post_ra>
